<compile_context>
chip_gen: v6e
topology: v6e:2x2x1
jax: 0.10.0
libtpu: 0.0.40
codegen_flags: <defaults>
</compile_context>

<pallas_src>
import functools

import jax
import jax.numpy as jnp
import numpy as np
from jax.experimental import pallas as pl
from jax.experimental.pallas import tpu as pltpu

EPS = 1e-5


# --------------------------------- kernel ---------------------------------
def regression_kernel(x_ref, w1_ref, w2_ref, w3_ref, v_ref, o_ref, *, fuse_taps):
    Bb, C, T = x_ref.shape
    N = Bb * T

    # NCW block -> time-major (Bb, T, C) on-chip (XLU transpose): channels land
    # on the lane axis so the convs become MXU matmuls with weights stationary.
    x = jnp.transpose(x_ref[...], (0, 2, 1)).astype(jnp.float32)

    def conv_k3(h, w_ref, bias):
        """k=3 / pad=1 conv as MXU matmul(s).  h: (Bb,T,Cin) f32 -> (Bb,T,Cout) f32.

        One zero-padded slab (Bb, T+2, Cin) provides both pad=1 boundaries per
        batch element (no cross-sample leakage); the three conv taps are static
        offset views of it -- no shifted full copies are built.
          fuse_taps=True  (small Cin): one (N, 3Cin) @ (3Cin, Cout) dot so the
                                       MXU contraction depth stays filled.
          fuse_taps=False (Cin >= 128): three (N, Cin) @ (Cin, Cout) dots
                                       accumulated in f32 -- the 3Cin-lane slab
                                       is never materialized.
        """
        cin = h.shape[2]
        cout = w_ref.shape[1]
        zero = jnp.zeros((Bb, 1, cin), jnp.float32)
        hp = jnp.concatenate([zero, h, zero], axis=1)            # (Bb, T+2, Cin)
        if fuse_taps:
            x3 = jnp.concatenate(
                [hp[:, 0:T, :], hp[:, 1:T + 1, :], hp[:, 2:T + 2, :]], axis=2)
            x3 = x3.reshape(N, 3 * cin).astype(w_ref.dtype)      # bf16 on v6e/v7x
            y = jnp.dot(x3, w_ref[...], preferred_element_type=jnp.float32)
        else:
            y = jnp.zeros((N, cout), jnp.float32)
            for k in range(3):                                   # static unroll
                xk = hp[:, k:k + T, :].reshape(N, cin).astype(w_ref.dtype)
                y = y + jnp.dot(xk, w_ref[k * cin:(k + 1) * cin, :],
                                preferred_element_type=jnp.float32)
        return y.reshape(Bb, T, cout) + bias

    def inorm_relu(h, gamma, beta):
        # InstanceNorm1d over time (biased variance, eps=1e-5), eval mode.
        # Single stats pass (E[x], E[x^2]); one fused scale*h+shift FMA pass.
        inv_t = 1.0 / T
        mean = jnp.sum(h, axis=1, keepdims=True) * inv_t
        ex2 = jnp.sum(h * h, axis=1, keepdims=True) * inv_t
        var = jnp.maximum(ex2 - mean * mean, 0.0)
        scale = gamma * jax.lax.rsqrt(var + EPS)
        shift = beta - scale * mean
        return jnp.maximum(h * scale + shift, 0.0)

    v = v_ref[...].astype(jnp.float32)          # (8, C): packed small params

    def vrow(i, n):
        return v[i:i + 1, :n].reshape(1, 1, n)

    # Layer 1: conv -> instance norm -> relu
    h = conv_k3(x, w1_ref, vrow(0, C))
    h = inorm_relu(h, vrow(1, C), vrow(2, C))
    # Layer 2: conv -> instance norm -> relu
    h = conv_k3(h, w2_ref, vrow(3, C))
    h = inorm_relu(h, vrow(4, C), vrow(5, C))
    # Layer 3: conv only (identity act, no norm, no residual)
    y = conv_k3(h, w3_ref, vrow(6, 2))                           # (Bb, T, 2)

    # Emit NCW (Bb, 2, T) directly: no wrapper-side output transpose; the lane
    # axis of the store is T (dense for realistic sequence lengths).
    o_ref[...] = jnp.transpose(y, (0, 2, 1)).astype(o_ref.dtype)


# --------------------------- resource heuristics ---------------------------
def _vmem_capacity_bytes():
    """Physical per-core VMEM (128 MiB v5e/v6e, 64 MiB v7x); safe fallback."""
    try:
        return int(pltpu.get_tpu_info().vmem_capacity_bytes)
    except Exception:
        return 64 << 20


def _pick_block_b(C, T, compute_bytes, fuse_taps, vmem_cap):
    """Batch block sized from the TOTAL in-kernel live footprint."""
    f32 = 4
    # Dominant per-batch-element live slabs inside the kernel:
    #   x / padded slab / conv out / normed result (f32)        ~4x T*C
    per_b = 4 * T * C * f32
    #   tap slab: fused -> (T, 3C) compute dtype; split -> (T, C)
    per_b += (3 if fuse_taps else 1) * T * C * compute_bytes
    #   double-buffered input block (compute dtype) + output block (f32)
    per_b += 2 * C * T * compute_bytes + 2 * 2 * T * f32
    # Grid-invariant operands (fused weights + packed vectors), double-buffered.
    fixed = 2 * ((3 * C * C + 3 * C * 2) * compute_bytes + 8 * C * f32)
    budget = int(vmem_cap * 0.55) - fixed
    return int(max(1, min(128, budget // max(per_b, 1))))


# --------------------------------- wrapper ---------------------------------
@functools.partial(jax.jit, static_argnames=("compute_dtype", "block_b"))
def regression_forward(x_nct, params, compute_dtype=jnp.float32, block_b=None):
    """x_nct: (B, C, T) float32 (PyTorch NCW layout).  Returns (B, 2, T) f32."""
    B, C, T = x_nct.shape
    (w1, b1, g1, be1, w2, b2, g2, be2, w3, b3) = params

    fuse_taps = C < 128                 # small C: fused 3-tap dot fills the MXU
    cbytes = jnp.dtype(compute_dtype).itemsize
    vmem_cap = _vmem_capacity_bytes()

    # Fuse the 3 conv taps: (3, Cin, Cout) -> (3*Cin, Cout), row blocks ordered
    # [k=0 (prev), k=1 (center), k=2 (next)] to match the in-kernel tap views.
    w1f = w1.reshape(3 * C, C).astype(compute_dtype)
    w2f = w2.reshape(3 * C, C).astype(compute_dtype)
    w3f = w3.reshape(3 * C, 2).astype(compute_dtype)

    # Pack all per-layer vectors into a single (8, C) array (one DMA).
    vec = jnp.zeros((8, C), jnp.float32)
    vec = vec.at[0].set(b1).at[1].set(g1).at[2].set(be1)
    vec = vec.at[3].set(b2).at[4].set(g2).at[5].set(be2)
    vec = vec.at[6, :2].set(b3)

    if block_b is None:
        Bb = min(_pick_block_b(C, T, cbytes, fuse_taps, vmem_cap), B)
        # Guarantee >= 2 grid steps when B >= 2 so v7x's two TensorCores both
        # run and the I/O DMAs have a step to pipeline against.
        if B >= 2:
            Bb = min(Bb, (B + 1) // 2)
        # Prefer a Bb that divides B (no all-padding grid step) as long as it
        # doesn't shrink the block by more than 2x.
        for d in range(Bb, 0, -1):
            if B % d == 0:
                if 2 * d >= Bb:
                    Bb = d
                break
        Bb = max(1, Bb)
    else:
        Bb = int(max(1, min(block_b, B)))
    B_pad = ((B + Bb - 1) // Bb) * Bb

    x_in = x_nct.astype(compute_dtype)
    if B_pad != B:
        x_in = jnp.pad(x_in, ((0, B_pad - B), (0, 0), (0, 0)))

    vmem_limit = int(min(vmem_cap * 3 // 4, 112 << 20))

    kernel = functools.partial(regression_kernel, fuse_taps=fuse_taps)
    out = pl.pallas_call(
        kernel,
        out_shape=jax.ShapeDtypeStruct((B_pad, 2, T), jnp.float32),
        grid=(B_pad // Bb,),
        in_specs=[
            pl.BlockSpec((Bb, C, T), lambda i: (i, 0, 0)),     # x (NCW block)
            pl.BlockSpec((3 * C, C), lambda i: (0, 0)),        # fused W1
            pl.BlockSpec((3 * C, C), lambda i: (0, 0)),        # fused W2
            pl.BlockSpec((3 * C, 2), lambda i: (0, 0)),        # fused W3
            pl.BlockSpec((8, C), lambda i: (0, 0)),            # packed vectors
        ],
        out_specs=pl.BlockSpec((Bb, 2, T), lambda i: (i, 0, 0)),
        compiler_params=pltpu.CompilerParams(
            dimension_semantics=("parallel",),
            vmem_limit_bytes=vmem_limit),
    )(x_in, w1f, w2f, w3f, vec)

    return out[:B]


# ----------------------- pure-JAX reference (NCW) -----------------------
def _ref_conv1d(x_nct, w_kio, b):
    # w_kio: (3, Cin, Cout) -> torch layout (Cout, Cin, 3)
    w_oik = jnp.transpose(w_kio, (2, 1, 0))
    y = jax.lax.conv_general_dilated(
        x_nct, w_oik, window_strides=(1,), padding=((1, 1),),
        dimension_numbers=("NCH", "OIH", "NCH"))
    return y + b[None, :, None]


def _ref_inorm(y, gamma, beta):
    mean = jnp.mean(y, axis=2, keepdims=True)
    var = jnp.mean((y - mean) ** 2, axis=2, keepdims=True)
    yhat = (y - mean) * jax.lax.rsqrt(var + EPS)
    return gamma[None, :, None] * yhat + beta[None, :, None]


def regression_reference(x_nct, params):
    (w1, b1, g1, be1, w2, b2, g2, be2, w3, b3) = params
    h = jnp.maximum(_ref_inorm(_ref_conv1d(x_nct, w1, b1), g1, be1), 0.0)
    h = jnp.maximum(_ref_inorm(_ref_conv1d(h, w2, b2), g2, be2), 0.0)
    return _ref_conv1d(h, w3, b3)


# --------------------------------- main ---------------------------------
if __name__ == "__main__":
    B, C, T = 2, 32, 16          # batch, feat_dim, sequence length

    key = jax.random.PRNGKey(0)
    ks = jax.random.split(key, 12)

    # Conv weights stored as (K=3, C_in, C_out); biases (C_out,).
    scale = 1.0 / np.sqrt(C * 3)
    w1 = jax.random.uniform(ks[0], (3, C, C), jnp.float32, -scale, scale)
    b1 = jax.random.uniform(ks[1], (C,), jnp.float32, -scale, scale)
    w2 = jax.random.uniform(ks[2], (3, C, C), jnp.float32, -scale, scale)
    b2 = jax.random.uniform(ks[3], (C,), jnp.float32, -scale, scale)
    w3 = jax.random.uniform(ks[4], (3, C, 2), jnp.float32, -scale, scale)
    b3 = jax.random.uniform(ks[5], (2,), jnp.float32, -scale, scale)
    # InstanceNorm affine params (learnable; randomized to exercise the math).
    g1 = 1.0 + 0.1 * jax.random.normal(ks[6], (C,), jnp.float32)
    be1 = 0.1 * jax.random.normal(ks[7], (C,), jnp.float32)
    g2 = 1.0 + 0.1 * jax.random.normal(ks[8], (C,), jnp.float32)
    be2 = 0.1 * jax.random.normal(ks[9], (C,), jnp.float32)

    params = (w1, b1, g1, be1, w2, b2, g2, be2, w3, b3)

    x = jax.random.normal(ks[10], (B, C, T), jnp.float32)   # NCW input

    # f32 path: exact check against the pure-JAX reference.
    out = jax.block_until_ready(regression_forward(x, params))
    ref = jax.block_until_ready(regression_reference(x, params))
    np.testing.assert_allclose(np.asarray(out), np.asarray(ref),
                               rtol=1e-4, atol=1e-4)
    assert out.shape == (B, 2, T)

    # Explicit block_b path (single-step grid) must agree too.
    out_bb = jax.block_until_ready(regression_forward(x, params, block_b=2))
    np.testing.assert_allclose(np.asarray(out_bb), np.asarray(ref),
                               rtol=1e-4, atol=1e-4)

    # bf16 MXU path (v6e/v7x optimization): matmul inputs bf16, accumulation
    # and InstanceNorm statistics in f32.  Coarse sanity tolerance.
    out_bf16 = jax.block_until_ready(
        regression_forward(x, params, compute_dtype=jnp.bfloat16))
    np.testing.assert_allclose(np.asarray(out_bf16), np.asarray(ref),
                               rtol=1e-1, atol=1e-1)

    print("KERNEL_OK")
</pallas_src>

<mosaic_0001>
module attributes {stable_mosaic.version = 11 : i64} {
  func.func @regression_kernel(%arg0: i32, %arg1: memref<1x32x16xf32, #tpu.memory_space<vmem>>, %arg2: memref<96x32xf32, #tpu.memory_space<vmem>>, %arg3: memref<96x32xf32, #tpu.memory_space<vmem>>, %arg4: memref<96x2xf32, #tpu.memory_space<vmem>>, %arg5: memref<8x32xf32, #tpu.memory_space<vmem>>, %arg6: memref<1x2x16xf32, #tpu.memory_space<vmem>>) attributes {dimension_semantics = [#tpu.dimension_semantics<parallel>], iteration_bounds = array<i64: 2>, scalar_prefetch = 0 : i64, scratch_operands = 0 : i64, tpu.core_type = #tpu.core_type<tc>, window_params = [{transform_indices = @transform_0, window_bounds = array<i64: 1, 32, 16>}, {pipeline_mode = #tpu.pipeline_mode<synchronous>, transform_indices = @transform_1, window_bounds = array<i64: 96, 32>}, {pipeline_mode = #tpu.pipeline_mode<synchronous>, transform_indices = @transform_2, window_bounds = array<i64: 96, 32>}, {pipeline_mode = #tpu.pipeline_mode<synchronous>, transform_indices = @transform_3, window_bounds = array<i64: 96, 2>}, {pipeline_mode = #tpu.pipeline_mode<synchronous>, transform_indices = @transform_4, window_bounds = array<i64: 8, 32>}, {transform_indices = @transform_5, window_bounds = array<i64: 1, 2, 16>}]} {
    %c0 = arith.constant 0 : index
    %c0_0 = arith.constant 0 : index
    %c0_1 = arith.constant 0 : index
    %0 = vector.load %arg1[%c0, %c0_0, %c0_1] : memref<1x32x16xf32, #tpu.memory_space<vmem>>, vector<1x32x16xf32>
    %1 = tpu.transpose %0, [0, 2, 1] : vector<1x32x16xf32> -> vector<1x16x32xf32>
    %c0_2 = arith.constant 0 : index
    %c0_3 = arith.constant 0 : index
    %2 = vector.load %arg5[%c0_2, %c0_3] : memref<8x32xf32, #tpu.memory_space<vmem>>, vector<8x32xf32>
    %3 = vector.extract_strided_slice %2 {offsets = [0, 0], sizes = [1, 32], strides = [1, 1]} : vector<8x32xf32> to vector<1x32xf32>
    %4 = vector.shape_cast %3 : vector<1x32xf32> to vector<1x1x32xf32>
    %cst = arith.constant 0.000000e+00 : f32
    %5 = vector.broadcast %cst : f32 to vector<1x1x32xf32>
    %6 = tpu.concatenate %5, %1, %5 in 1 : vector<1x1x32xf32>, vector<1x16x32xf32>, vector<1x1x32xf32> -> vector<1x18x32xf32>
    %7 = vector.extract_strided_slice %6 {offsets = [0, 0, 0], sizes = [1, 16, 32], strides = [1, 1, 1]} : vector<1x18x32xf32> to vector<1x16x32xf32>
    %8 = vector.extract_strided_slice %6 {offsets = [0, 1, 0], sizes = [1, 16, 32], strides = [1, 1, 1]} : vector<1x18x32xf32> to vector<1x16x32xf32>
    %9 = vector.extract_strided_slice %6 {offsets = [0, 2, 0], sizes = [1, 16, 32], strides = [1, 1, 1]} : vector<1x18x32xf32> to vector<1x16x32xf32>
    %10 = tpu.concatenate %7, %8, %9 in 2 : vector<1x16x32xf32>, vector<1x16x32xf32>, vector<1x16x32xf32> -> vector<1x16x96xf32>
    %11 = vector.shape_cast %10 : vector<1x16x96xf32> to vector<16x96xf32>
    %c0_4 = arith.constant 0 : index
    %c0_5 = arith.constant 0 : index
    %12 = vector.load %arg2[%c0_4, %c0_5] : memref<96x32xf32, #tpu.memory_space<vmem>>, vector<96x32xf32>
    %cst_6 = arith.constant dense<0.000000e+00> : vector<16x32xf32>
    %13 = tpu.matmul %11, %12, %cst_6 {dimension_numbers = #tpu.dot_dimension_numbers<[1], [0], [0], [1], [0, 0, 1, 1], [], []>} : vector<16x96xf32>, vector<96x32xf32>, vector<16x32xf32> -> vector<16x32xf32>
    %14 = vector.shape_cast %13 : vector<16x32xf32> to vector<1x16x32xf32>
    %15 = vector.broadcast %4 : vector<1x1x32xf32> to vector<1x16x32xf32>
    %16 = arith.addf %14, %15 : vector<1x16x32xf32>
    %17 = vector.extract_strided_slice %2 {offsets = [1, 0], sizes = [1, 32], strides = [1, 1]} : vector<8x32xf32> to vector<1x32xf32>
    %18 = vector.shape_cast %17 : vector<1x32xf32> to vector<1x1x32xf32>
    %19 = vector.extract_strided_slice %2 {offsets = [2, 0], sizes = [1, 32], strides = [1, 1]} : vector<8x32xf32> to vector<1x32xf32>
    %20 = vector.shape_cast %19 : vector<1x32xf32> to vector<1x1x32xf32>
    %cst_7 = arith.constant dense<0.000000e+00> : vector<1x32xf32>
    %21 = vector.multi_reduction <add>, %16, %cst_7 [1] : vector<1x16x32xf32> to vector<1x32xf32>
    %22 = vector.shape_cast %21 : vector<1x32xf32> to vector<1x1x32xf32>
    %cst_8 = arith.constant 6.250000e-02 : f32
    %23 = vector.broadcast %cst_8 : f32 to vector<1x1x32xf32>
    %24 = arith.mulf %22, %23 : vector<1x1x32xf32>
    %25 = arith.mulf %16, %16 : vector<1x16x32xf32>
    %cst_9 = arith.constant dense<0.000000e+00> : vector<1x32xf32>
    %26 = vector.multi_reduction <add>, %25, %cst_9 [1] : vector<1x16x32xf32> to vector<1x32xf32>
    %27 = vector.shape_cast %26 : vector<1x32xf32> to vector<1x1x32xf32>
    %cst_10 = arith.constant 6.250000e-02 : f32
    %28 = vector.broadcast %cst_10 : f32 to vector<1x1x32xf32>
    %29 = arith.mulf %27, %28 : vector<1x1x32xf32>
    %30 = arith.mulf %24, %24 : vector<1x1x32xf32>
    %31 = arith.subf %29, %30 : vector<1x1x32xf32>
    %cst_11 = arith.constant 0.000000e+00 : f32
    %32 = vector.broadcast %cst_11 : f32 to vector<1x1x32xf32>
    %33 = arith.maximumf %31, %32 : vector<1x1x32xf32>
    %cst_12 = arith.constant 9.99999974E-6 : f32
    %34 = vector.broadcast %cst_12 : f32 to vector<1x1x32xf32>
    %35 = arith.addf %33, %34 : vector<1x1x32xf32>
    %36 = math.rsqrt %35 : vector<1x1x32xf32>
    %37 = arith.mulf %18, %36 : vector<1x1x32xf32>
    %38 = arith.mulf %37, %24 : vector<1x1x32xf32>
    %39 = arith.subf %20, %38 : vector<1x1x32xf32>
    %40 = vector.broadcast %37 : vector<1x1x32xf32> to vector<1x16x32xf32>
    %41 = arith.mulf %16, %40 : vector<1x16x32xf32>
    %42 = vector.broadcast %39 : vector<1x1x32xf32> to vector<1x16x32xf32>
    %43 = arith.addf %41, %42 : vector<1x16x32xf32>
    %cst_13 = arith.constant 0.000000e+00 : f32
    %44 = vector.broadcast %cst_13 : f32 to vector<1x16x32xf32>
    %45 = arith.maximumf %43, %44 : vector<1x16x32xf32>
    %46 = vector.extract_strided_slice %2 {offsets = [3, 0], sizes = [1, 32], strides = [1, 1]} : vector<8x32xf32> to vector<1x32xf32>
    %47 = vector.shape_cast %46 : vector<1x32xf32> to vector<1x1x32xf32>
    %cst_14 = arith.constant 0.000000e+00 : f32
    %48 = vector.broadcast %cst_14 : f32 to vector<1x1x32xf32>
    %49 = tpu.concatenate %48, %45, %48 in 1 : vector<1x1x32xf32>, vector<1x16x32xf32>, vector<1x1x32xf32> -> vector<1x18x32xf32>
    %50 = vector.extract_strided_slice %49 {offsets = [0, 0, 0], sizes = [1, 16, 32], strides = [1, 1, 1]} : vector<1x18x32xf32> to vector<1x16x32xf32>
    %51 = vector.extract_strided_slice %49 {offsets = [0, 1, 0], sizes = [1, 16, 32], strides = [1, 1, 1]} : vector<1x18x32xf32> to vector<1x16x32xf32>
    %52 = vector.extract_strided_slice %49 {offsets = [0, 2, 0], sizes = [1, 16, 32], strides = [1, 1, 1]} : vector<1x18x32xf32> to vector<1x16x32xf32>
    %53 = tpu.concatenate %50, %51, %52 in 2 : vector<1x16x32xf32>, vector<1x16x32xf32>, vector<1x16x32xf32> -> vector<1x16x96xf32>
    %54 = vector.shape_cast %53 : vector<1x16x96xf32> to vector<16x96xf32>
    %c0_15 = arith.constant 0 : index
    %c0_16 = arith.constant 0 : index
    %55 = vector.load %arg3[%c0_15, %c0_16] : memref<96x32xf32, #tpu.memory_space<vmem>>, vector<96x32xf32>
    %cst_17 = arith.constant dense<0.000000e+00> : vector<16x32xf32>
    %56 = tpu.matmul %54, %55, %cst_17 {dimension_numbers = #tpu.dot_dimension_numbers<[1], [0], [0], [1], [0, 0, 1, 1], [], []>} : vector<16x96xf32>, vector<96x32xf32>, vector<16x32xf32> -> vector<16x32xf32>
    %57 = vector.shape_cast %56 : vector<16x32xf32> to vector<1x16x32xf32>
    %58 = vector.broadcast %47 : vector<1x1x32xf32> to vector<1x16x32xf32>
    %59 = arith.addf %57, %58 : vector<1x16x32xf32>
    %60 = vector.extract_strided_slice %2 {offsets = [4, 0], sizes = [1, 32], strides = [1, 1]} : vector<8x32xf32> to vector<1x32xf32>
    %61 = vector.shape_cast %60 : vector<1x32xf32> to vector<1x1x32xf32>
    %62 = vector.extract_strided_slice %2 {offsets = [5, 0], sizes = [1, 32], strides = [1, 1]} : vector<8x32xf32> to vector<1x32xf32>
    %63 = vector.shape_cast %62 : vector<1x32xf32> to vector<1x1x32xf32>
    %cst_18 = arith.constant dense<0.000000e+00> : vector<1x32xf32>
    %64 = vector.multi_reduction <add>, %59, %cst_18 [1] : vector<1x16x32xf32> to vector<1x32xf32>
    %65 = vector.shape_cast %64 : vector<1x32xf32> to vector<1x1x32xf32>
    %cst_19 = arith.constant 6.250000e-02 : f32
    %66 = vector.broadcast %cst_19 : f32 to vector<1x1x32xf32>
    %67 = arith.mulf %65, %66 : vector<1x1x32xf32>
    %68 = arith.mulf %59, %59 : vector<1x16x32xf32>
    %cst_20 = arith.constant dense<0.000000e+00> : vector<1x32xf32>
    %69 = vector.multi_reduction <add>, %68, %cst_20 [1] : vector<1x16x32xf32> to vector<1x32xf32>
    %70 = vector.shape_cast %69 : vector<1x32xf32> to vector<1x1x32xf32>
    %cst_21 = arith.constant 6.250000e-02 : f32
    %71 = vector.broadcast %cst_21 : f32 to vector<1x1x32xf32>
    %72 = arith.mulf %70, %71 : vector<1x1x32xf32>
    %73 = arith.mulf %67, %67 : vector<1x1x32xf32>
    %74 = arith.subf %72, %73 : vector<1x1x32xf32>
    %cst_22 = arith.constant 0.000000e+00 : f32
    %75 = vector.broadcast %cst_22 : f32 to vector<1x1x32xf32>
    %76 = arith.maximumf %74, %75 : vector<1x1x32xf32>
    %cst_23 = arith.constant 9.99999974E-6 : f32
    %77 = vector.broadcast %cst_23 : f32 to vector<1x1x32xf32>
    %78 = arith.addf %76, %77 : vector<1x1x32xf32>
    %79 = math.rsqrt %78 : vector<1x1x32xf32>
    %80 = arith.mulf %61, %79 : vector<1x1x32xf32>
    %81 = arith.mulf %80, %67 : vector<1x1x32xf32>
    %82 = arith.subf %63, %81 : vector<1x1x32xf32>
    %83 = vector.broadcast %80 : vector<1x1x32xf32> to vector<1x16x32xf32>
    %84 = arith.mulf %59, %83 : vector<1x16x32xf32>
    %85 = vector.broadcast %82 : vector<1x1x32xf32> to vector<1x16x32xf32>
    %86 = arith.addf %84, %85 : vector<1x16x32xf32>
    %cst_24 = arith.constant 0.000000e+00 : f32
    %87 = vector.broadcast %cst_24 : f32 to vector<1x16x32xf32>
    %88 = arith.maximumf %86, %87 : vector<1x16x32xf32>
    %89 = vector.extract_strided_slice %2 {offsets = [6, 0], sizes = [1, 2], strides = [1, 1]} : vector<8x32xf32> to vector<1x2xf32>
    %90 = vector.shape_cast %89 : vector<1x2xf32> to vector<1x1x2xf32>
    %cst_25 = arith.constant 0.000000e+00 : f32
    %91 = vector.broadcast %cst_25 : f32 to vector<1x1x32xf32>
    %92 = tpu.concatenate %91, %88, %91 in 1 : vector<1x1x32xf32>, vector<1x16x32xf32>, vector<1x1x32xf32> -> vector<1x18x32xf32>
    %93 = vector.extract_strided_slice %92 {offsets = [0, 0, 0], sizes = [1, 16, 32], strides = [1, 1, 1]} : vector<1x18x32xf32> to vector<1x16x32xf32>
    %94 = vector.extract_strided_slice %92 {offsets = [0, 1, 0], sizes = [1, 16, 32], strides = [1, 1, 1]} : vector<1x18x32xf32> to vector<1x16x32xf32>
    %95 = vector.extract_strided_slice %92 {offsets = [0, 2, 0], sizes = [1, 16, 32], strides = [1, 1, 1]} : vector<1x18x32xf32> to vector<1x16x32xf32>
    %96 = tpu.concatenate %93, %94, %95 in 2 : vector<1x16x32xf32>, vector<1x16x32xf32>, vector<1x16x32xf32> -> vector<1x16x96xf32>
    %97 = vector.shape_cast %96 : vector<1x16x96xf32> to vector<16x96xf32>
    %c0_26 = arith.constant 0 : index
    %c0_27 = arith.constant 0 : index
    %98 = vector.load %arg4[%c0_26, %c0_27] : memref<96x2xf32, #tpu.memory_space<vmem>>, vector<96x2xf32>
    %cst_28 = arith.constant dense<0.000000e+00> : vector<16x2xf32>
    %99 = tpu.matmul %97, %98, %cst_28 {dimension_numbers = #tpu.dot_dimension_numbers<[1], [0], [0], [1], [0, 0, 1, 1], [], []>} : vector<16x96xf32>, vector<96x2xf32>, vector<16x2xf32> -> vector<16x2xf32>
    %100 = vector.shape_cast %99 : vector<16x2xf32> to vector<1x16x2xf32>
    %101 = vector.broadcast %90 : vector<1x1x2xf32> to vector<1x16x2xf32>
    %102 = arith.addf %100, %101 : vector<1x16x2xf32>
    %103 = tpu.transpose %102, [0, 2, 1] : vector<1x16x2xf32> -> vector<1x2x16xf32>
    %c0_29 = arith.constant 0 : index
    %c0_30 = arith.constant 0 : index
    %c0_31 = arith.constant 0 : index
    %104 = vector.load %arg6[%c0_29, %c0_30, %c0_31] : memref<1x2x16xf32, #tpu.memory_space<vmem>>, vector<1x2x16xf32>
    tpu.vector_store %arg6[%c0_29, %c0_30, %c0_31], %103 {strides = array<i32>} : memref<1x2x16xf32, #tpu.memory_space<vmem>>, vector<1x2x16xf32>,
    return
  }
  func.func @transform_0(%arg0: i32) -> (i32, i32, i32) {
    %c0_i32 = arith.constant 0 : i32
    %c0_i32_0 = arith.constant 0 : i32
    %c0_i32_1 = arith.constant 0 : i32
    return %arg0, %c0_i32, %c0_i32_0 : i32, i32, i32
  }
  func.func @transform_1(%arg0: i32) -> (i32, i32) {
    %c0_i32 = arith.constant 0 : i32
    %c0_i32_0 = arith.constant 0 : i32
    %c0_i32_1 = arith.constant 0 : i32
    return %c0_i32, %c0_i32_0 : i32, i32
  }
  func.func @transform_2(%arg0: i32) -> (i32, i32) {
    %c0_i32 = arith.constant 0 : i32
    %c0_i32_0 = arith.constant 0 : i32
    %c0_i32_1 = arith.constant 0 : i32
    return %c0_i32, %c0_i32_0 : i32, i32
  }
  func.func @transform_3(%arg0: i32) -> (i32, i32) {
    %c0_i32 = arith.constant 0 : i32
    %c0_i32_0 = arith.constant 0 : i32
    %c0_i32_1 = arith.constant 0 : i32
    return %c0_i32, %c0_i32_0 : i32, i32
  }
  func.func @transform_4(%arg0: i32) -> (i32, i32) {
    %c0_i32 = arith.constant 0 : i32
    %c0_i32_0 = arith.constant 0 : i32
    %c0_i32_1 = arith.constant 0 : i32
    return %c0_i32, %c0_i32_0 : i32, i32
  }
  func.func @transform_5(%arg0: i32) -> (i32, i32, i32) {
    %c0_i32 = arith.constant 0 : i32
    %c0_i32_0 = arith.constant 0 : i32
    %c0_i32_1 = arith.constant 0 : i32
    return %arg0, %c0_i32, %c0_i32_0 : i32, i32, i32
  }
}

</mosaic_0001>

<bundles_post_ra>
// kernel: regression_forward.1
= control target key start
LH: loop header
LB: loop body
LE: loop exit
PB: predicated region body
PF: predicated region fallthrough
CT: control target
= control target key end

     0   :  { %10 = vsyncpa [#allocation3], 0  ;;  %s1441_s0 = inlined_call_operand.vmem [shape: f32[2,32,16], index: 0, kind: input, shape index: {}]   ;;  %s1442_s1 = inlined_call_operand.vmem [shape: f32[96,32], index: 1, kind: input, shape index: {}]   ;;  %s1443_s2 = inlined_call_operand.vmem [shape: f32[96,32], index: 2, kind: input, shape index: {}]   ;;  %s1444_s3 = inlined_call_operand.vmem [shape: f32[96,2], index: 3, kind: input, shape index: {}]   ;;  %s1445_s4 = inlined_call_operand.vmem [shape: f32[8,32], index: 4, kind: input, shape index: {}]   ;;  %s1446_s5 = inlined_call_operand.hbm [shape: f32[2,2,16], index: 5, kind: output, shape index: {}]  }
   0x1   :  { %12 = vsyncpa [#allocation3 + $0x1], 0  ;;  %s1160_s18 = smov 0   ;;  %s1162_s19 = smov 0  }
   0x2   :  { %s1164_s20 = smov 0   ;;  %s1166_s21 = smov 0  }
   0x3 LB: > { %s1181_s22 = sadd.s32 4294967295, %s1125_s21   ;;  %s878_s23 = sadd.s32 4294967294, %s1125_s21   ;;  %s1125_s21 = sphi %s1166_s21, %s1452_s21   ;;  %s1121_s20 = sphi %s1164_s20, %s1451_s20   ;;  %s1117_s19 = sphi %s1162_s19, %s1450_s19   ;;  %s1113_s18 = sphi %s1160_s18, %s1449_s18  }
   0x4   : > { %s1185_s24 = sadd.s32 1, %s1125_s21   ;;  %s135_s25 = sadd.s32 1, %s1121_s20 }
   0x5   : > { %s132_s26 = ssub.s32 %s1125_s21, %s1185_s24  ;;  %p145_p0 = scmp.ne.s32.totalorder %s1121_s20, %s1117_s19 }
   0x6   : > { %p133_p1 = scmp.eq.s32.totalorder %s132_s26, 0  ;;  %p146_p2 = scmp.eq.s32.totalorder %s1181_s22, 1 }
   0x7   : > { %p151_p3 = scmp.ne.s32.totalorder %s1117_s19, %s1113_s18  ;;  %p152_p4 = scmp.eq.s32.totalorder %s878_s23, 1 }
   0x8   : > { %s1196_s27 = scalar_select %p133_p1, %s1121_s20, %s135_s25  }
   0x9   : > { %p1198_p5 = por %p146_p2, %p145_p0  ;;  %p1202_p6 = por %p152_p4, %p151_p3 }
   0xa   : > { %p881_p7 = scmp.ge.s32.totalorder %s1125_s21, 1  ;;  %p190_p8 = scmp.lt.s32.totalorder %s1125_s21, 3 }
   0xc   : > { %p191_p9 = pnand %p881_p7, %p190_p8 }
   0xd   : > { %p218_p10 = scmp.lt.s32.totalorder (!%p191_p9), %s1181_s22, 1  ;;  %s1127_s23 = smov (!%p191_p9), 32  }
   0xe   : > { %194 = sbr.rel (%p191_p9) target bundleno = 1386 (0x56a), region = 40  ;;  %s1128_s25 = smov (!%p191_p9), 64  }
   0xf   : > { %s892_s12 = sshll.u32 (!%p191_p9), %s1181_s22, 5 }
  0x10   : > { %s1406_s17 = scalar_lea.hbm (!%p191_p9), %s1446_s5, %s892_s12 }
  0x13   : > { %s219_s30 = scalar_select %p218_p10, %s1181_s22, 1  ;;  %v314_v4 = vld [vmem:[%s1442_s1 + $0x58] sm:$0xff]  ;;  %v313_v5 = vld [vmem:[%s1442_s1 + $0x50] sm:$0xff]  ;;  %v312_v6 = vld [vmem:[%s1442_s1 + $0x48] sm:$0xff]  ;;  %vm262_vm0 = vcmask 1040384   ;;  %vm273_vm1 = vcmask 1046528   ;;  %v397_v49 = vlaneseq }
  0x14   : > { %938 = vmatprep.subr.mxu0 %v314_v4  ;;  %v311_v7 = vld [vmem:[%s1442_s1 + $0x40] sm:$0xff]  ;;  %v310_v8 = vld [vmem:[%s1442_s1 + $0x38] sm:$0xff]  ;;  %v309_v9 = vld [vmem:[%s1442_s1 + $0x30] sm:$0xff]  ;;  %vm285_vm2 = vcmask 1045504   ;;  %vm297_vm3 = vcmask 261120   ;;  %vm300_vm4 = vcmask 523264  }
  0x15   : > { %s895_s6 = sshll.u32 %s219_s30, 5  ;;  %939 = vmatpush3.msra.mxu0 %v314_v4  ;;  %v308_v10 = vld [vmem:[%s1442_s1 + $0x28] sm:$0xff]  ;;  %v307_v11 = vld [vmem:[%s1442_s1 + $0x20] sm:$0xff]  ;;  %v306_v14 = vld [vmem:[%s1442_s1 + $0x18] sm:$0xff]  ;;  %vm315_vm5 = vcmask 785408   ;;  %v1290_v50 = vshrl.u32 %v397_v49, 7 }
  0x16   : > { %s222_s9 = scalar_lea.vmem %s1441_s0, %s895_s6  ;;  %940 = vmatprep.subr.mxu0 %v313_v5  ;;  %v305_v15 = vld [vmem:[%s1442_s1 + $0x10] sm:$0xff]  ;;  %v304_v19 = vld [vmem:[%s1442_s1 + $0x8] sm:$0xff]  ;;  %v303_v22 = vld [vmem:[%s1442_s1] sm:$0xff]  ;;  %vm803_vm6 = vcmask 123904   ;;  %s1129_s6 = smov [#allocation2]  }
  0x17   : > { %v223_v0 = vld [vmem:[%s222_s9] sm:$0xff]  ;;  %v224_v1 = vld [vmem:[%s222_s9 + $0x8] sm:$0xff]  ;;  %v225_v2 = vld [vmem:[%s222_s9 + $0x10] sm:$0xff]  ;;  %941 = vmatpush3.msra.mxu0 %v313_v5  ;;  %v399_v51 = vsub.s32 0, %v1290_v50  ;;  %s1069_s7 = sshll.u32 %s1129_s6, 4  ;;  %s1070_s7 = int_to_ptr.vmem [resolvable:$false] %s1069_s7 }
  0x18   : > { %227 = vxpose.xlu0.b32.start [1/4] (short) (narrow) %v223_v0, 16  ;;  %v226_v3 = vld [vmem:[%s222_s9 + $0x18] sm:$0xff]  ;;  %942 = vmatprep.subr.mxu0 %v312_v6  ;;  %v498_v42 = vld [vmem:[%s1443_s2 + $0x50] sm:$0xff]  ;;  %v497_v43 = vld [vmem:[%s1443_s2 + $0x48] sm:$0xff]  ;;  %s1071_s22 = scalar_lea.vmem %s1070_s7, 64 }
  0x19   : > { %943 = vmatpush3.msra.mxu0 %v312_v6  ;;  %v499_v41 = vld [vmem:[%s1443_s2 + $0x58] sm:$0xff]  ;;  %v496_v44 = vld [vmem:[%s1443_s2 + $0x40] sm:$0xff]  ;;  %v494_v46 = vld [vmem:[%s1443_s2 + $0x30] sm:$0xff] }
  0x1a   : > { %944 = vmatprep.subr.mxu0 %v311_v7  ;;  %965 = vmatprep.subr.mxu1 %v499_v41  ;;  %v495_v45 = vld [vmem:[%s1443_s2 + $0x38] sm:$0xff]  ;;  %v493_v47 = vld [vmem:[%s1443_s2 + $0x28] sm:$0xff]  ;;  %v492_v48 = vld [vmem:[%s1443_s2 + $0x20] sm:$0xff] }
  0x1b   : > { %945 = vmatpush3.msra.mxu0 %v311_v7  ;;  %966 = vmatpush3.msra.mxu1 %v499_v41  ;;  %v1296_v52 = vld [vmem:[%s1445_s4] sm:$0xff] }
  0x1c   : > { %228 = vxpose.xlu0.b32.cont [2/4] (short) (narrow) %v224_v1, 16  ;;  %946 = vmatprep.subr.mxu0 %v310_v8  ;;  %v400_v53 = vrot.slane %v1296_v52, %v399_v51 }
  0x1d   : > { %947 = vmatpush3.msra.mxu0 %v310_v8  ;;  %967 = vmatprep.subr.mxu1 %v498_v42 }
  0x1e   : > { %948 = vmatprep.subr.mxu0 %v309_v9  ;;  %968 = vmatpush3.msra.mxu1 %v498_v42 }
  0x1f   : > { %949 = vmatpush3.msra.mxu0 %v309_v9  ;;  %969 = vmatprep.subr.mxu1 %v497_v43 }
  0x20   : > { %229 = vxpose.xlu0.b32.cont [3/4] (short) (narrow) %v225_v2, 16  ;;  %950 = vmatprep.subr.mxu0 %v308_v10 }
  0x21   : > { %951 = vmatpush3.msra.mxu0 %v308_v10  ;;  %970 = vmatpush3.msra.mxu1 %v497_v43 }
  0x22   : > { %952 = vmatprep.subr.mxu0 %v307_v11  ;;  %971 = vmatprep.subr.mxu1 %v496_v44 }
  0x23   : > { %953 = vmatpush3.msra.mxu0 %v307_v11  ;;  %972 = vmatpush3.msra.mxu1 %v496_v44 }
  0x24   : > { %230 = vxpose.xlu0.b32.end [4/4] (short) (narrow) %v226_v3, 16  ;;  %954 = vmatprep.subr.mxu0 %v306_v14 }
  0x25   : > { %955 = vmatpush3.msra.mxu0 %v306_v14  ;;  %973 = vmatprep.subr.mxu1 %v495_v45 }
  0x26   : > { %956 = vmatprep.subr.mxu0 %v305_v15  ;;  %974 = vmatpush3.msra.mxu1 %v495_v45 }
  0x27   : > { %957 = vmatpush3.msra.mxu0 %v305_v15  ;;  %975 = vmatprep.subr.mxu1 %v494_v46 }
  0x28   : > { %958 = vmatprep.subr.mxu0 %v304_v19  ;;  %976 = vmatpush3.msra.mxu1 %v494_v46 }
  0x29   : > { %959 = vmatpush3.msra.mxu0 %v304_v19  ;;  %977 = vmatprep.subr.mxu1 %v493_v47 }
  0x2a   : > { %960 = vmatprep.subr.mxu0 %v303_v22  ;;  %978 = vmatpush3.msra.mxu1 %v493_v47 }
  0x2b   : > { %961 = vmatpush3.msra.mxu0 %v303_v22  ;;  %979 = vmatprep.subr.mxu1 %v492_v48  ;;  %v438_v22 = vsub.s32 1, %v1290_v50 }
  0x2c   : > { %980 = vmatpush3.msra.mxu1 %v492_v48 }
  0x94   : > { %v243_v12 = vpop.trf.xlu0 }
  0x95   : > { %v263_v13 = vrot.slane %v243_v12, 7 }
  0x97   : > { %v269_v17 = vsel %vm262_vm0, 0.0, %v263_v13 }
  0x98   : > { %v244_v16 = vpop.trf.xlu0  ;;  %v274_v23 = vrot.slane %v269_v17, 1  ;;  %v286_v29 = vrot.slane %v269_v17, 2 }
  0x99   : > { %v264_v18 = vrot.slane %v244_v16, 7 }
  0x9b   : > { %v265_v20 = vsel %vm262_vm0, %v263_v13, %v264_v18  ;;  %v270_v21 = vsel %vm262_vm0, %v264_v18, 0.0 }
  0x9c   : > { %v275_v24 = vrot.slane %v265_v20, 1  ;;  %v277_v25 = vrot.slane %v270_v21, 1  ;;  %v287_v28 = vrot.slane %v265_v20, 2  ;;  %v289_v30 = vrot.slane %v270_v21, 2 }
  0x9e   : > { %v276_v26 = vsel %vm273_vm1, %v274_v23, %v275_v24  ;;  %v278_v27 = vsel %vm273_vm1, %v275_v24, %v277_v25  ;;  %v288_v31 = vsel %vm285_vm2, %v286_v29, %v287_v28  ;;  %v290_v32 = vsel %vm285_vm2, %v287_v28, %v289_v30  ;;  %v491_v28 = vld [vmem:[%s1443_s2 + $0x18] sm:$0xff]  ;;  %v490_v29 = vld [vmem:[%s1443_s2 + $0x10] sm:$0xff] }
  0x9f   : > { %279 = vrot.lane.b32.xlu1 %v276_v26, %s1127_s23  ;;  %v444_v26 = vsub.s32 2, %v1290_v50  ;;  %981 = vmatprep.subr.mxu1 %v491_v28 }
  0xa0   : > { %982 = vmatpush3.msra.mxu1 %v491_v28 }
  0xa1   : > { %983 = vmatprep.subr.mxu1 %v490_v29 }
  0xa2   : > { %984 = vmatpush3.msra.mxu1 %v490_v29 }
  0xa3   : > { %281 = vrot.lane.b32.xlu1 %v278_v27, %s1127_s23 }
  0xa7   : > { %291 = vrot.lane.b32.xlu1 %v288_v31, %s1128_s25 }
  0xab   : > { %293 = vrot.lane.b32.xlu1 %v290_v32, %s1128_s25 }
 0x111   : > { %v280_v33 = vpop.permute.xlu1 %279 }
 0x112   : > { %v298_v35 = vsel %vm297_vm3, %v269_v17, %v280_v33 }
 0x115   : > { %v282_v34 = vpop.permute.xlu1 %281 }
 0x116   : > { %v299_v38 = vsel %vm297_vm3, %v265_v20, %v282_v34 }
 0x119   : > { %v292_v36 = vpop.permute.xlu1 %291 }
 0x11a   : > { %v301_v37 = vsel %vm300_vm4, %v298_v35, %v292_v36  ;;  %v489_v35 = vld [vmem:[%s1443_s2 + $0x8] sm:$0xff] }
 0x11b   : > { %962 = vmatprep.mubr.msk.f32.mxu0 %vm315_vm5, %v301_v37  ;;  %985 = vmatprep.subr.mxu1 %v489_v35 }
 0x11c   : > { %986 = vmatpush3.msra.mxu1 %v489_v35 }
 0x11d   : > { %v294_v39 = vpop.permute.xlu1 %293 }
 0x11e   : > { %v302_v40 = vsel %vm300_vm4, %v299_v38, %v294_v39  ;;  %v488_v38 = vld [vmem:[%s1443_s2] sm:$0xff] }
 0x11f   : > { %963 = vmatmul.mubr.msk.f32.vlgmr.msra.gmra.mxu0 %vm315_vm5, %v302_v40  ;;  %987 = vmatprep.subr.mxu1 %v488_v38 }
 0x120   : > { %988 = vmatpush3.msra.mxu1 %v488_v38 }
 0x1df   : > { %v964_v54 = vpop.f32.mrf.mxu0 }
 0x1e0   : > { %v402_v55 = vadd.f32 %v964_v54, %v400_v53 }
 0x1e1   : > { %v388_v56 = vpop.f32.mrf.mxu0 }
 0x1e2   : > { %v414_v57 = vmul.f32 %v402_v55, %v402_v55  ;;  %v401_v58 = vadd.f32 %v400_v53, %v388_v56  ;;  %v404_v59 = vsel %vm297_vm3, %v402_v55, 0.0 }
 0x1e4   : > { %v403_v60 = vsel %vm297_vm3, %v401_v58, 0.0  ;;  %v413_v61 = vmul.f32 %v401_v58, %v401_v58  ;;  %v416_v63 = vsel %vm297_vm3, %v414_v57, 0.0 }
 0x1e5   : > { %v405_v62 = vadd.f32 %v404_v59, %v403_v60 }
 0x1e6   : > { %v415_v0 = vsel %vm297_vm3, %v413_v61, 0.0 }
 0x1e7   : > { %v406_v1 = vrot.slane %v405_v62, 4  ;;  %v417_v2 = vadd.f32 %v416_v63, %v415_v0  ;;  %v683_v0 = vld [vmem:[%s1444_s3 + $0x58] sm:$0xff] }
 0x1e8   : > { %992 = vmatprep.subr.mxu0 %v683_v0 }
 0x1e9   : > { %v407_v3 = vadd.f32 %v406_v1, %v405_v62  ;;  %v418_v4 = vrot.slane %v417_v2, 4  ;;  %v682_v1 = vld [vmem:[%s1444_s3 + $0x50] sm:$0xff]  ;;  %993 = vmatpush3.msra.mxu0 %v683_v0 }
 0x1ea   : > { %994 = vmatprep.subr.mxu0 %v682_v1 }
 0x1eb   : > { %v408_v5 = vrot.slane %v407_v3, 2  ;;  %v419_v6 = vadd.f32 %v418_v4, %v417_v2  ;;  %v681_v2 = vld [vmem:[%s1444_s3 + $0x48] sm:$0xff]  ;;  %995 = vmatpush3.msra.mxu0 %v682_v1  ;;  %v679_v4 = vld [vmem:[%s1444_s3 + $0x38] sm:$0xff]  ;;  %v672_v1 = vld [vmem:[%s1444_s3] sm:$0xff] }
 0x1ec   : > { %996 = vmatprep.subr.mxu0 %v681_v2 }
 0x1ed   : > { %v409_v7 = vadd.f32 %v408_v5, %v407_v3  ;;  %v420_v8 = vrot.slane %v419_v6, 2  ;;  %v680_v3 = vld [vmem:[%s1444_s3 + $0x40] sm:$0xff]  ;;  %997 = vmatpush3.msra.mxu0 %v681_v2  ;;  %v678_v5 = vld [vmem:[%s1444_s3 + $0x30] sm:$0xff] }
 0x1ee   : > { %998 = vmatprep.subr.mxu0 %v680_v3 }
 0x1ef   : > { %v410_v9 = vrot.slane %v409_v7, 1  ;;  %v421_v10 = vadd.f32 %v420_v8, %v419_v6  ;;  %999 = vmatpush3.msra.mxu0 %v680_v3  ;;  %v583_v6 = vsub.s32 3, %v1290_v50 }
 0x1f0   : > { %1000 = vmatprep.subr.mxu0 %v679_v4 }
 0x1f1   : > { %v411_v11 = vadd.f32 %v410_v9, %v409_v7  ;;  %v422_v12 = vrot.slane %v421_v10, 1  ;;  %1001 = vmatpush3.msra.mxu0 %v679_v4  ;;  %v584_v7 = vrot.slane %v1296_v52, %v583_v6 }
 0x1f2   : > { %1002 = vmatprep.subr.mxu0 %v678_v5 }
 0x1f3   : > { %v412_v13 = vmul.f32 0.0625, %v411_v11  ;;  %v423_v14 = vadd.f32 %v422_v12, %v421_v10  ;;  %1003 = vmatpush3.msra.mxu0 %v678_v5 }
 0x1f5   : > { %v424_v15 = vmul.f32 0.0625, %v423_v14  ;;  %v425_v16 = vmul.f32 %v412_v13, %v412_v13 }
 0x1f7   : > { %v426_v17 = vsub.f32 %v424_v15, %v425_v16 }
 0x1f9   : > { %v427_v18 = vmax.f32 %v426_v17, 0.0 }
 0x1fb   : > { %v428_v19 = vadd.f32 1e-05, %v427_v18 }
 0x1fd   : > { %1061 = vrsqrt.f32 %v428_v19 }
 0x20a   : > { %v1062_v20 = vpop.eup %1061 }
 0x20b   : > { %v430_v21 = vmul.f32 %v1062_v20, %v1296_v52 }
 0x20d   : > { %v431_v23 = vmul.f32 %v430_v21, %v412_v13  ;;  %v439_v25 = vrot.slane %v430_v21, %v438_v22 }
 0x20f   : > { %v433_v24 = vrot.slane %v431_v23, 7  ;;  %v440_v30 = vmul.f32 %v439_v25, %v401_v58  ;;  %v441_v31 = vmul.f32 %v439_v25, %v402_v55 }
 0x211   : > { %v435_v27 = vsub.f32 %v1296_v52, %v433_v24 }
 0x213   : > { %v445_v32 = vrot.slane %v435_v27, %v444_v26 }
 0x215   : > { %v446_v33 = vadd.f32 %v445_v32, %v440_v30  ;;  %v447_v34 = vadd.f32 %v445_v32, %v441_v31 }
 0x217   : > { %v448_v36 = vmax.f32 %v446_v33, 0.0  ;;  %v449_v37 = vmax.f32 %v447_v34, 0.0 }
 0x219   : > { %v452_v39 = vrot.slane %v448_v36, 7  ;;  %v453_v40 = vrot.slane %v449_v37, 7 }
 0x21b   : > { %v454_v41 = vsel %vm262_vm0, %v452_v39, %v453_v40  ;;  %v459_v42 = vsel %vm262_vm0, %v453_v40, 0.0  ;;  %v458_v43 = vsel %vm262_vm0, 0.0, %v452_v39  ;;  %v622_v40 = vsub.s32 4, %v1290_v50 }
 0x21c   : > { %v463_v44 = vrot.slane %v454_v41, 1  ;;  %v465_v45 = vrot.slane %v459_v42, 1  ;;  %v462_v46 = vrot.slane %v458_v43, 1  ;;  %v473_v49 = vrot.slane %v458_v43, 2 }
 0x21d   : > { %v474_v51 = vrot.slane %v454_v41, 2  ;;  %v476_v54 = vrot.slane %v459_v42, 2 }
 0x21e   : > { %v466_v47 = vsel %vm273_vm1, %v463_v44, %v465_v45  ;;  %v464_v48 = vsel %vm273_vm1, %v462_v46, %v463_v44  ;;  %v628_v44 = vsub.s32 5, %v1290_v50  ;;  %v677_v46 = vld [vmem:[%s1444_s3 + $0x28] sm:$0xff] }
 0x21f   : > { %469 = vrot.lane.b32.xlu1 %v466_v47, %s1127_s23  ;;  %467 = vrot.lane.b32.xlu0 %v464_v48, %s1127_s23  ;;  %v475_v53 = vsel %vm285_vm2, %v473_v49, %v474_v51  ;;  %v477_v55 = vsel %vm285_vm2, %v474_v51, %v476_v54  ;;  %v676_v47 = vld [vmem:[%s1444_s3 + $0x20] sm:$0xff] }
 0x220   : > { %1004 = vmatprep.subr.mxu0 %v677_v46 }
 0x221   : > { %1005 = vmatpush3.msra.mxu0 %v677_v46 }
 0x222   : > { %1006 = vmatprep.subr.mxu0 %v676_v47 }
 0x223   : > { %478 = vrot.lane.b32.xlu1 %v475_v53, %s1128_s25  ;;  %1007 = vmatpush3.msra.mxu0 %v676_v47 }
 0x227   : > { %480 = vrot.lane.b32.xlu1 %v477_v55, %s1128_s25  ;;  %v675_v55 = vld [vmem:[%s1444_s3 + $0x18] sm:$0xff] }
 0x228   : > { %1008 = vmatprep.subr.mxu0 %v675_v55 }
 0x229   : > { %1009 = vmatpush3.msra.mxu0 %v675_v55 }
 0x291   : > { %v470_v56 = vpop.permute.xlu1 %469  ;;  %v468_v57 = vpop.permute.xlu0 %467 }
 0x292   : > { %v484_v58 = vsel %vm297_vm3, %v458_v43, %v468_v57  ;;  %v485_v61 = vsel %vm297_vm3, %v454_v41, %v470_v56  ;;  %v674_v56 = vld [vmem:[%s1444_s3 + $0x10] sm:$0xff] }
 0x293   : > { %1010 = vmatprep.subr.mxu0 %v674_v56 }
 0x294   : > { %1011 = vmatpush3.msra.mxu0 %v674_v56 }
 0x295   : > { %v479_v59 = vpop.permute.xlu1 %478 }
 0x296   : > { %v486_v60 = vsel %vm300_vm4, %v484_v58, %v479_v59 }
 0x297   : > { %989 = vmatprep.mubr.msk.f32.mxu1 %vm315_vm5, %v486_v60 }
 0x299   : > { %v481_v62 = vpop.permute.xlu1 %480 }
 0x29a   : > { %v487_v63 = vsel %vm300_vm4, %v485_v61, %v481_v62  ;;  %v673_v61 = vld [vmem:[%s1444_s3 + $0x8] sm:$0xff] }
 0x29b   : > { %990 = vmatmul.mubr.msk.f32.vlgmr.msra.gmra.mxu1 %vm315_vm5, %v487_v63  ;;  %1012 = vmatprep.subr.mxu0 %v673_v61 }
 0x29c   : > { %1013 = vmatpush3.msra.mxu0 %v673_v61 }
 0x29d   : > { %1014 = vmatprep.subr.mxu0 %v672_v1 }
 0x29e   : > { %1015 = vmatpush3.msra.mxu0 %v672_v1 }
 0x35b   : > { %v991_v8 = vpop.f32.mrf.mxu1 }
 0x35c   : > { %v586_v9 = vadd.f32 %v991_v8, %v584_v7 }
 0x35d   : > { %v572_v10 = vpop.f32.mrf.mxu1 }
 0x35e   : > { %v598_v11 = vmul.f32 %v586_v9, %v586_v9  ;;  %v585_v12 = vadd.f32 %v584_v7, %v572_v10  ;;  %v588_v13 = vsel %vm297_vm3, %v586_v9, 0.0 }
 0x360   : > { %v587_v14 = vsel %vm297_vm3, %v585_v12, 0.0  ;;  %v597_v15 = vmul.f32 %v585_v12, %v585_v12  ;;  %v600_v17 = vsel %vm297_vm3, %v598_v11, 0.0 }
 0x361   : > { %v589_v16 = vadd.f32 %v588_v13, %v587_v14 }
 0x362   : > { %v599_v18 = vsel %vm297_vm3, %v597_v15, 0.0 }
 0x363   : > { %v590_v19 = vrot.slane %v589_v16, 4  ;;  %v601_v20 = vadd.f32 %v600_v17, %v599_v18 }
 0x365   : > { %v591_v21 = vadd.f32 %v590_v19, %v589_v16  ;;  %v602_v22 = vrot.slane %v601_v20, 4 }
 0x367   : > { %v592_v23 = vrot.slane %v591_v21, 2  ;;  %v603_v24 = vadd.f32 %v602_v22, %v601_v20  ;;  %v767_v20 = vsub.s32 6, %v1290_v50 }
 0x369   : > { %v593_v25 = vadd.f32 %v592_v23, %v591_v21  ;;  %v604_v26 = vrot.slane %v603_v24, 2  ;;  %v768_v22 = vrot.slane %v1296_v52, %v767_v20 }
 0x36b   : > { %v594_v27 = vrot.slane %v593_v25, 1  ;;  %v605_v28 = vadd.f32 %v604_v26, %v603_v24 }
 0x36d   : > { %v595_v29 = vadd.f32 %v594_v27, %v593_v25  ;;  %v606_v30 = vrot.slane %v605_v28, 1 }
 0x36f   : > { %v596_v31 = vmul.f32 0.0625, %v595_v29  ;;  %v607_v32 = vadd.f32 %v606_v30, %v605_v28 }
 0x371   : > { %v608_v33 = vmul.f32 0.0625, %v607_v32  ;;  %v609_v34 = vmul.f32 %v596_v31, %v596_v31 }
 0x373   : > { %v610_v35 = vsub.f32 %v608_v33, %v609_v34 }
 0x375   : > { %v611_v36 = vmax.f32 %v610_v35, 0.0 }
 0x377   : > { %v612_v37 = vadd.f32 1e-05, %v611_v36 }
 0x379   : > { %1063 = vrsqrt.f32 %v612_v37 }
 0x386   : > { %v1064_v38 = vpop.eup %1063 }
 0x387   : > { %v614_v39 = vmul.f32 %v1064_v38, %v1296_v52 }
 0x389   : > { %v615_v41 = vmul.f32 %v614_v39, %v596_v31  ;;  %v623_v43 = vrot.slane %v614_v39, %v622_v40 }
 0x38b   : > { %v617_v42 = vrot.slane %v615_v41, 7  ;;  %v624_v48 = vmul.f32 %v623_v43, %v585_v12  ;;  %v625_v49 = vmul.f32 %v623_v43, %v586_v9 }
 0x38d   : > { %v619_v45 = vsub.f32 %v1296_v52, %v617_v42 }
 0x38f   : > { %v629_v51 = vrot.slane %v619_v45, %v628_v44 }
 0x391   : > { %v630_v53 = vadd.f32 %v629_v51, %v624_v48  ;;  %v631_v54 = vadd.f32 %v629_v51, %v625_v49 }
 0x393   : > { %v632_v57 = vmax.f32 %v630_v53, 0.0  ;;  %v633_v58 = vmax.f32 %v631_v54, 0.0 }
 0x395   : > { %v636_v59 = vrot.slane %v632_v57, 7  ;;  %v637_v60 = vrot.slane %v633_v58, 7 }
 0x397   : > { %v638_v62 = vsel %vm262_vm0, %v636_v59, %v637_v60  ;;  %v642_v63 = vsel %vm262_vm0, 0.0, %v636_v59  ;;  %v643_v0 = vsel %vm262_vm0, %v637_v60, 0.0 }
 0x398   : > { %v646_v2 = vrot.slane %v642_v63, 1  ;;  %v647_v3 = vrot.slane %v638_v62, 1  ;;  %v649_v5 = vrot.slane %v643_v0, 1  ;;  %v657_v7 = vrot.slane %v642_v63, 2 }
 0x399   : > { %v658_v8 = vrot.slane %v638_v62, 2  ;;  %v660_v10 = vrot.slane %v643_v0, 2 }
 0x39a   : > { %v648_v4 = vsel %vm273_vm1, %v646_v2, %v647_v3  ;;  %v650_v6 = vsel %vm273_vm1, %v647_v3, %v649_v5 }
 0x39b   : > { %651 = vrot.lane.b32.xlu1 %v648_v4, %s1127_s23  ;;  %v659_v9 = vsel %vm285_vm2, %v657_v7, %v658_v8  ;;  %v661_v11 = vsel %vm285_vm2, %v658_v8, %v660_v10 }
 0x39f   : > { %653 = vrot.lane.b32.xlu1 %v650_v6, %s1127_s23  ;;  %s215_s23 = sand.u32 1, %s1117_s19  }
 0x3a0   : > { %s806_s26 = scalar_lea.sflag [#allocation3], %s215_s23 }
 0x3a3   : > { %662 = vrot.lane.b32.xlu1 %v659_v9, %s1128_s25 }
 0x3a7   : > { %664 = vrot.lane.b32.xlu1 %v661_v11, %s1128_s25  ;;  %s882_s25 = sshll.u32 %s215_s23, 1 }
 0x3a8   : > { %s217_s13 = scalar_lea.vmem [#allocation2], %s882_s25 }
 0x3a9   : > { %s819_s14 = sshll.u32 %s217_s13, 4  ;;  %s820_s14 = int_to_ptr.vmem [resolvable:$true] %s819_s14 }
 0x3aa   : > { %s1065_s30 = scalar_lea.vmem %s820_s14, 32  ;;  %p1072_p0 = scmp.lt.s32.totalorder %s820_s14, %s1070_s7 }
 0x3ab   : > { %p1066_p11 = scmp.ne.s32.totalorder %s820_s14, %s1065_s30  ;;  %p1073_p1 = scmp.lt.s32.totalorder %s1071_s22, %s1065_s30 }
 0x3ad   : > { %p1067_p12 = pnand %p1066_p11, %p1198_p5  ;;  %p1074_p2 = por %p1073_p1, %p1072_p0 }
 0x3af   : > { %p1068_p13 = pneg %p1067_p12 }
 0x3b1   : > { %p1075_p3 = pnand %p1074_p2, %p1068_p13 }
 0x40d   : > { %v652_v12 = vpop.permute.xlu1 %651 }
 0x40e   : > { %v668_v14 = vsel %vm297_vm3, %v642_v63, %v652_v12 }
 0x411   : > { %v654_v13 = vpop.permute.xlu1 %653 }
 0x412   : > { %v669_v17 = vsel %vm297_vm3, %v638_v62, %v654_v13 }
 0x415   : > { %v663_v15 = vpop.permute.xlu1 %662 }
 0x416   : > { %v670_v16 = vsel %vm300_vm4, %v668_v14, %v663_v15 }
 0x417   : > { %1016 = vmatprep.mubr.msk.f32.mxu0 %vm315_vm5, %v670_v16 }
 0x419   : > { %v665_v18 = vpop.permute.xlu1 %664 }
 0x41a   : > { %v671_v19 = vsel %vm300_vm4, %v669_v17, %v665_v18 }
 0x41b   : > { %1017 = vmatmul.mubr.msk.f32.vlgmr.msra.gmra.mxu0 %vm315_vm5, %v671_v19 }
 0x4db   : > { %v1018_v21 = vpop.f32.mrf.mxu0 }
 0x4dc   : > { %v770_v25 = vadd.f32 %v1018_v21, %v768_v22 }
 0x4dd   : > { %v756_v23 = vpop.f32.mrf.mxu0 }
 0x4de   : > { %v769_v24 = vadd.f32 %v768_v22, %v756_v23 }
 0x4e0   : > { %771 = vxpose.xlu1.b32.start [1/2] (short) (narrow) %v769_v24, 8 }
 0x4e4   : > { %772 = vxpose.xlu1.b32.end [2/2] (short) (narrow) %v770_v25, 8 }
 0x55c   : > { %v787_v50 = vpop.trf.xlu1 }
 0x55d   : > { %804 = vst.msk [vmem:[%s217_s13] sm:$0x3] %vm803_vm6, %v787_v50 }
 0x55e   : > { %1078 = shalt.err (!%p1075_p3)
}
 0x55f   : > { %s1079_s8 = scalar_lea.hbm %s1406_s17, 32  ;;  %s1083_s11 = scalar_lea.hbm %s1446_s5, 64 }
 0x560   : > { %p1080_p4 = scmp.ne.s32.totalorder %s1406_s17, %s1079_s8  ;;  %p1084_p9 = scmp.lt.s32.totalorder %s1406_s17, %s1446_s5 }
 0x561   : > { %p1085_p10 = scmp.lt.s32.totalorder %s1083_s11, %s1079_s8 }
 0x562   : > { %p1081_p7 = pnand %p1080_p4, %p1198_p5 }
 0x563   : > { %p1086_p11 = por %p1085_p10, %p1084_p9 }
 0x564   : > { %p1082_p8 = pneg %p1081_p7 }
 0x566   : > { %p1087_p12 = pnand %p1086_p11, %p1082_p8 }
 0x568   : > { %1090 = shalt.err (!%p1087_p12)
}
 0x569   : > { %1019 = dma.vmem_to_hbm [thread:$0]  (%p1198_p5), %s820_s14, 32, %s1406_s17, %s806_s26  }
 0x56a PF: > { %p1025_p13 = scmp.ge.s32.totalorder %s1125_s21, 2  ;;  %s831_s12 = sand.u32 1, %s1113_s18  }
 0x56b   : > { %s832_s13 = scalar_lea.sflag [#allocation3], %s831_s12 }
 0x56c   : > { %p1022_p0 = pnand %p1025_p13, %p1202_p6 }
 0x56e   : > { %p1023_p1 = pneg %p1022_p0 }
 0x570   : > { %1108 = dma.done.wait (%p1023_p1), %s832_s13, 32  }
 0x571   : > { %1110 = vsyncadd (%p1023_p1), %s832_s13, 4294967264  ;;  %p15_p2 = scmp.ge.s32.totalorder %s1185_s24, 4   ;;  %s1449_s18 = smov %s1117_s19 }
 0x572   : > { %s1450_s19 = smov %s1121_s20  ;;  %s1451_s20 = smov %s1196_s27 }
 0x573   : > { %s1452_s21 = smov %s1185_s24  ;;  %17 = sbr.rel (!%p15_p2) target bundleno = 3 (0x3), region = 75 }
 0x578   :  { %837 = vsyncpa [#allocation3], 1 }
 0x579   :  { %839 = vsyncpa [#allocation3 + $0x1], 1 }

</bundles_post_ra>
